<compile_context>
chip_gen: v5e
topology: v5e:2x2
jax: 0.10.0
libtpu: 0.0.40
codegen_flags: <defaults>
</compile_context>

<pallas_src>
import jax
import jax.numpy as jnp
from jax.experimental import pallas as pl
from jax.experimental.pallas import tpu as pltpu


def _round_up(x, m):
    return ((x + m - 1) // m) * m


def _choose_b_tile(batch, tile_lo, li_pad, e2, d, budget_bytes=20 * 1024 * 1024):
    """Largest divisor of `batch` (<=8) whose double-buffered major blocks fit."""
    for bt in range(min(batch, 8), 0, -1):
        if batch % bt:
            continue
        per_step = bt * (tile_lo * li_pad      # attn out block
                         + li_pad * e2         # context block
                         + 2 * tile_lo * d     # output in + o out blocks
                         + 2 * tile_lo * e2    # q / wctx intermediates
                         ) * 4
        if 2 * per_step <= budget_bytes:       # BlockSpec double-buffers
            return bt
    return 1


def _make_kernel(li, li_pad, e2, d, matmul_dtype):
    """Builds the per-(batch-tile, Lo-tile) kernel body."""
    needs_col_mask = (li_pad != li)

    def kernel(out_ref, ctx_ref, w_in_ref, w_out_ref, b_out_ref, o_ref, attn_ref):
        bt, tlo, _ = out_ref.shape
        out = out_ref[...]                       # (Bt, Tlo, D)
        ctx = ctx_ref[...]                       # (Bt, Li_pad, 2E)
        w_in = w_in_ref[...]                     # (D, 2E)   -- as stored by nn.Linear
        w_out = w_out_ref[...]                   # (D, 2E+D) -- as stored by nn.Linear
        w_oc = w_out[:, :e2]                     # (D, 2E)
        w_oo = w_out[:, e2:]                     # (D, D)

        if matmul_dtype is not None:
            out_mm = out.astype(matmul_dtype)
            ctx_mm = ctx.astype(matmul_dtype)
            w_in = w_in.astype(matmul_dtype)
            w_oc = w_oc.astype(matmul_dtype)
            w_oo = w_oo.astype(matmul_dtype)
        else:
            out_mm, ctx_mm = out, ctx

        # ---- q = output @ W_in   (reordered projection:
        #      (out @ W1) @ ctx^T  ==  out @ (ctx @ W1^T)^T )
        # Stack batch rows so the shared-weight matmul fills the MXU.
        out_flat = out_mm.reshape(bt * tlo, d)
        q = jax.lax.dot_general(
            out_flat, w_in,
            dimension_numbers=(((1,), (0,)), ((), ())),
            preferred_element_type=jnp.float32).reshape(bt, tlo, e2)
        q_mm = q if matmul_dtype is None else q.astype(matmul_dtype)

        # ---- scores[b, q, k] = q[b, q, :] . ctx[b, k, :]  (batched NT matmul;
        #      no transpose is materialized)
        scores = jax.lax.dot_general(
            q_mm, ctx_mm,
            dimension_numbers=(((2,), (2,)), ((0,), (0,))),
            preferred_element_type=jnp.float32)          # (Bt, Tlo, Li_pad)

        if needs_col_mask:
            col = jax.lax.broadcasted_iota(jnp.int32, scores.shape, 2)
            scores = jnp.where(col < li, scores, jnp.float32(-1e30))
        # NOTE: the module's attention `mask` is intentionally NOT applied
        # (the PyTorch masked_fill is out-of-place and its result discarded).

        # ---- softmax over the key axis (f32 throughout)
        m = jnp.max(scores, axis=-1, keepdims=True)
        e = jnp.exp(scores - m)
        denom = jnp.sum(e, axis=-1, keepdims=True)        # (Bt, Tlo, 1)
        r = pl.reciprocal(denom, approx=True)             # EUP slot
        r = r * (2.0 - denom * r)                         # one Newton step
        attn = e * r
        attn_ref[...] = attn.astype(attn_ref.dtype)

        # ---- weighted context = attn @ ctx   (batched matmul)
        attn_mm = attn if matmul_dtype is None else attn.astype(matmul_dtype)
        wctx = jax.lax.dot_general(
            attn_mm, ctx_mm,
            dimension_numbers=(((2,), (1,)), ((0,), (0,))),
            preferred_element_type=jnp.float32)           # (Bt, Tlo, 2E)

        # ---- linear_out(cat(wctx, out)) == wctx @ Woc^T + out @ Woo^T + b
        # (NT matmuls on stacked batch rows; weights never transposed in HBM)
        wctx_flat = wctx.reshape(bt * tlo, e2)
        wctx_mm = wctx_flat if matmul_dtype is None else wctx_flat.astype(matmul_dtype)
        pre = jax.lax.dot_general(
            wctx_mm, w_oc,
            dimension_numbers=(((1,), (1,)), ((), ())),
            preferred_element_type=jnp.float32)
        pre = pre + jax.lax.dot_general(
            out_flat, w_oo,
            dimension_numbers=(((1,), (1,)), ((), ())),
            preferred_element_type=jnp.float32)
        pre = pre + b_out_ref[...]                        # (1, D) broadcasts
        o_ref[...] = jnp.tanh(pre).reshape(bt, tlo, d).astype(o_ref.dtype)

    return kernel


def attention_forward(output, context, mask, w_in, w_out, b_out, *,
                      matmul_dtype=None):
    """Pallas version of Attention.forward.

    output : (B, Lo, D)   decoder states
    context: (B, Li, 2E)  encoder states
    mask   : (B, Lo, Li)  bool (unused -- see semantics note at top)
    w_in   : (D, 2E)      linear_in.weight   (passed as stored, no transpose)
    w_out  : (D, 2E + D)  linear_out.weight  (passed as stored, no transpose)
    b_out  : (D,)         linear_out.bias
    matmul_dtype: optional (e.g. jnp.bfloat16) cast of matmul operands for
                  extra MXU throughput on v6e/v7x; accumulation stays f32.
    returns (out, attn) with shapes (B, Lo, D), (B, Lo, Li)
    """
    del mask  # no effect in the reference forward pass
    B, Lo, D = output.shape
    Bc, Li, E2 = context.shape
    assert Bc == B and w_in.shape == (D, E2) and w_out.shape == (D, E2 + D)

    # Lane-dense attn writeback: pad the key axis to a multiple of 128
    # (no-op when Li is already 128-aligned, the common realistic case).
    Li_pad = max(_round_up(Li, 128), 128)
    context_p = (context if Li_pad == Li
                 else jnp.pad(context, ((0, 0), (0, Li_pad - Li), (0, 0))))

    # Tile Lo so the (TILE_LO, Li_pad) f32 attention block stays VMEM-friendly.
    if Lo <= 256:
        TILE_LO, Lo_pad, output_p = Lo, Lo, output
    else:
        TILE_LO = 256
        Lo_pad = _round_up(Lo, TILE_LO)
        output_p = (output if Lo_pad == Lo
                    else jnp.pad(output, ((0, 0), (0, Lo_pad - Lo), (0, 0))))

    B_TILE = _choose_b_tile(B, TILE_LO, Li_pad, E2, D)
    b_out2 = b_out.reshape(1, D)

    kernel = _make_kernel(Li, Li_pad, E2, D, matmul_dtype)

    out_shapes = (
        jax.ShapeDtypeStruct((B, Lo_pad, D), output.dtype),
        jax.ShapeDtypeStruct((B, Lo_pad, Li_pad), jnp.float32),
    )

    grid = (B // B_TILE, Lo_pad // TILE_LO)

    grid_spec = pltpu.PrefetchScalarGridSpec(
        num_scalar_prefetch=0,
        grid=grid,
        in_specs=[
            pl.BlockSpec((B_TILE, TILE_LO, D), lambda b, i: (b, i, 0)),
            pl.BlockSpec((B_TILE, Li_pad, E2), lambda b, i: (b, 0, 0)),
            pl.BlockSpec((D, E2), lambda b, i: (0, 0)),
            pl.BlockSpec((D, E2 + D), lambda b, i: (0, 0)),
            pl.BlockSpec((1, D), lambda b, i: (0, 0)),
        ],
        out_specs=[
            pl.BlockSpec((B_TILE, TILE_LO, D), lambda b, i: (b, i, 0)),
            pl.BlockSpec((B_TILE, TILE_LO, Li_pad), lambda b, i: (b, i, 0)),
        ],
    )

    out_p, attn_p = pl.pallas_call(
        kernel,
        out_shape=out_shapes,
        grid_spec=grid_spec,
        compiler_params=pltpu.CompilerParams(
            dimension_semantics=("parallel", "parallel"),
            vmem_limit_bytes=64 * 1024 * 1024),
    )(output_p, context_p, w_in, w_out, b_out2)

    # Strip padding (no-op when shapes were already aligned).
    if Lo_pad != Lo:
        out_p = out_p[:, :Lo, :]
        attn_p = attn_p[:, :Lo, :]
    if Li_pad != Li:
        attn_p = attn_p[:, :, :Li]
    return out_p, attn_p


def attention_reference(output, context, mask, w_in, w_out, b_out):
    """Pure-JAX reference mirroring the PyTorch forward exactly."""
    del mask
    ctx_in = jnp.einsum('ble,de->bld', context, w_in)            # (B, Li, D)
    attn = jnp.einsum('bqd,bkd->bqk', output, ctx_in)            # (B, Lo, Li)
    attn = jax.nn.softmax(attn, axis=2)
    wctx = jnp.einsum('bqk,bke->bqe', attn, context)             # (B, Lo, 2E)
    cat = jnp.concatenate([wctx, output], axis=2)                # (B, Lo, 2E+D)
    out = jnp.tanh(jnp.einsum('bqf,df->bqd', cat, w_out) + b_out)
    return out, attn


if __name__ == "__main__":
    # Small shapes consistent with the module's forward.
    B = 2
    output_len = 8
    input_len = 8
    enc_hidden = 16           # -> context feature dim = 2 * enc_hidden = 32
    dec_hidden = 32

    E2 = 2 * enc_hidden
    D = dec_hidden

    key = jax.random.PRNGKey(0)
    k1, k2, k3, k4, k5, k6 = jax.random.split(key, 6)

    output = jax.random.normal(k1, (B, output_len, D), dtype=jnp.float32)
    context = jax.random.normal(k2, (B, input_len, E2), dtype=jnp.float32)
    mask = jax.random.bernoulli(k3, 0.2, (B, output_len, input_len))

    # Deterministic parameter init mimicking nn.Linear's U(-1/sqrt(fan_in), ...).
    bound_in = 1.0 / (E2 ** 0.5)
    bound_out = 1.0 / ((E2 + D) ** 0.5)
    w_in = jax.random.uniform(k4, (D, E2), jnp.float32, -bound_in, bound_in)
    w_out = jax.random.uniform(k5, (D, E2 + D), jnp.float32, -bound_out, bound_out)
    b_out = jax.random.uniform(k6, (D,), jnp.float32, -bound_out, bound_out)

    out_pl, attn_pl = attention_forward(output, context, mask, w_in, w_out, b_out)
    jax.block_until_ready((out_pl, attn_pl))

    out_ref, attn_ref = attention_reference(output, context, mask, w_in, w_out, b_out)
    # Tolerance loosened slightly vs 1e-5: the kernel reorders the projection
    # ((out @ W1) @ ctx^T) and uses a Newton-refined approx reciprocal.
    assert out_pl.shape == out_ref.shape and attn_pl.shape == attn_ref.shape
    assert jnp.allclose(out_pl, out_ref, atol=1e-4, rtol=1e-4)
    assert jnp.allclose(attn_pl, attn_ref, atol=1e-4, rtol=1e-4)

    print("KERNEL_OK")
</pallas_src>

<mosaic_0001>
module attributes {stable_mosaic.version = 11 : i64} {
  func.func @kernel(%arg0: i32, %arg1: i32, %arg2: memref<2x8x32xf32, #tpu.memory_space<vmem>>, %arg3: memref<2x128x32xf32, #tpu.memory_space<vmem>>, %arg4: memref<32x32xf32, #tpu.memory_space<vmem>>, %arg5: memref<32x64xf32, #tpu.memory_space<vmem>>, %arg6: memref<1x32xf32, #tpu.memory_space<vmem>>, %arg7: memref<2x8x32xf32, #tpu.memory_space<vmem>>, %arg8: memref<2x8x128xf32, #tpu.memory_space<vmem>>) attributes {dimension_semantics = [#tpu.dimension_semantics<parallel>, #tpu.dimension_semantics<parallel>], iteration_bounds = array<i64: 1, 1>, scalar_prefetch = 0 : i64, scratch_operands = 0 : i64, tpu.core_type = #tpu.core_type<tc>, window_params = [{transform_indices = @transform_0, window_bounds = array<i64: 2, 8, 32>}, {transform_indices = @transform_1, window_bounds = array<i64: 2, 128, 32>}, {pipeline_mode = #tpu.pipeline_mode<synchronous>, transform_indices = @transform_2, window_bounds = array<i64: 32, 32>}, {pipeline_mode = #tpu.pipeline_mode<synchronous>, transform_indices = @transform_3, window_bounds = array<i64: 32, 64>}, {pipeline_mode = #tpu.pipeline_mode<synchronous>, transform_indices = @transform_4, window_bounds = array<i64: 1, 32>}, {transform_indices = @transform_5, window_bounds = array<i64: 2, 8, 32>}, {transform_indices = @transform_6, window_bounds = array<i64: 2, 8, 128>}]} {
    %c0 = arith.constant 0 : index
    %c0_0 = arith.constant 0 : index
    %c0_1 = arith.constant 0 : index
    %0 = vector.load %arg2[%c0, %c0_0, %c0_1] : memref<2x8x32xf32, #tpu.memory_space<vmem>>, vector<2x8x32xf32>
    %c0_2 = arith.constant 0 : index
    %c0_3 = arith.constant 0 : index
    %c0_4 = arith.constant 0 : index
    %1 = vector.load %arg3[%c0_2, %c0_3, %c0_4] : memref<2x128x32xf32, #tpu.memory_space<vmem>>, vector<2x128x32xf32>
    %c0_5 = arith.constant 0 : index
    %c0_6 = arith.constant 0 : index
    %2 = vector.load %arg4[%c0_5, %c0_6] : memref<32x32xf32, #tpu.memory_space<vmem>>, vector<32x32xf32>
    %c0_7 = arith.constant 0 : index
    %c0_8 = arith.constant 0 : index
    %3 = vector.load %arg5[%c0_7, %c0_8] : memref<32x64xf32, #tpu.memory_space<vmem>>, vector<32x64xf32>
    %4 = vector.extract_strided_slice %3 {offsets = [0, 0], sizes = [32, 32], strides = [1, 1]} : vector<32x64xf32> to vector<32x32xf32>
    %5 = vector.extract_strided_slice %3 {offsets = [0, 32], sizes = [32, 32], strides = [1, 1]} : vector<32x64xf32> to vector<32x32xf32>
    %6 = vector.shape_cast %0 : vector<2x8x32xf32> to vector<16x32xf32>
    %cst = arith.constant dense<0.000000e+00> : vector<16x32xf32>
    %7 = tpu.matmul %6, %2, %cst {dimension_numbers = #tpu.dot_dimension_numbers<[1], [0], [0], [1], [0, 0, 1, 1], [], []>} : vector<16x32xf32>, vector<32x32xf32>, vector<16x32xf32> -> vector<16x32xf32>
    %8 = vector.shape_cast %7 : vector<16x32xf32> to vector<2x8x32xf32>
    %cst_9 = arith.constant dense<0.000000e+00> : vector<2x8x128xf32>
    %9 = tpu.matmul %8, %1, %cst_9 {dimension_numbers = #tpu.dot_dimension_numbers<[2], [2], [1], [1], [0, 0, 0, 1, 1, 1], [0], [0]>} : vector<2x8x32xf32>, vector<2x128x32xf32>, vector<2x8x128xf32> -> vector<2x8x128xf32>
    %10 = tpu.iota {dimensions = array<i32: 2>} : vector<2x8x128xi32>
    %c8_i32 = arith.constant 8 : i32
    %11 = vector.broadcast %c8_i32 : i32 to vector<2x8x128xi32>
    %12 = arith.cmpi slt, %10, %11 : vector<2x8x128xi32>
    %cst_10 = arith.constant -1.000000e+30 : f32
    %13 = vector.broadcast %cst_10 : f32 to vector<2x8x128xf32>
    %14 = arith.select %12, %9, %13 : vector<2x8x128xi1>, vector<2x8x128xf32>
    %cst_11 = arith.constant dense<0xFF800000> : vector<2x8xf32>
    %15 = vector.multi_reduction <maximumf>, %14, %cst_11 [2] : vector<2x8x128xf32> to vector<2x8xf32>
    %16 = vector.shape_cast %15 : vector<2x8xf32> to vector<2x8x1xf32>
    %17 = vector.broadcast %16 : vector<2x8x1xf32> to vector<2x8x128xf32>
    %18 = arith.subf %14, %17 : vector<2x8x128xf32>
    %19 = math.exp %18 : vector<2x8x128xf32>
    %cst_12 = arith.constant dense<0.000000e+00> : vector<2x8xf32>
    %20 = vector.multi_reduction <add>, %19, %cst_12 [2] : vector<2x8x128xf32> to vector<2x8xf32>
    %21 = vector.shape_cast %20 : vector<2x8xf32> to vector<2x8x1xf32>
    %22 = tpu.reciprocal %21 {approx = true} : vector<2x8x1xf32> -> vector<2x8x1xf32>
    %23 = arith.mulf %21, %22 : vector<2x8x1xf32>
    %cst_13 = arith.constant 2.000000e+00 : f32
    %24 = vector.broadcast %cst_13 : f32 to vector<2x8x1xf32>
    %25 = arith.subf %24, %23 : vector<2x8x1xf32>
    %26 = arith.mulf %22, %25 : vector<2x8x1xf32>
    %27 = vector.broadcast %26 : vector<2x8x1xf32> to vector<2x8x128xf32>
    %28 = arith.mulf %19, %27 : vector<2x8x128xf32>
    %c0_14 = arith.constant 0 : index
    %c0_15 = arith.constant 0 : index
    %c0_16 = arith.constant 0 : index
    %29 = vector.load %arg8[%c0_14, %c0_15, %c0_16] : memref<2x8x128xf32, #tpu.memory_space<vmem>>, vector<2x8x128xf32>
    tpu.vector_store %arg8[%c0_14, %c0_15, %c0_16], %28 {strides = array<i32>} : memref<2x8x128xf32, #tpu.memory_space<vmem>>, vector<2x8x128xf32>,
    %cst_17 = arith.constant dense<0.000000e+00> : vector<2x8x32xf32>
    %30 = tpu.matmul %28, %1, %cst_17 {dimension_numbers = #tpu.dot_dimension_numbers<[2], [1], [1], [2], [0, 0, 0, 1, 1, 2], [0], [0]>} : vector<2x8x128xf32>, vector<2x128x32xf32>, vector<2x8x32xf32> -> vector<2x8x32xf32>
    %31 = vector.shape_cast %30 : vector<2x8x32xf32> to vector<16x32xf32>
    %cst_18 = arith.constant dense<0.000000e+00> : vector<16x32xf32>
    %32 = tpu.matmul %31, %4, %cst_18 {dimension_numbers = #tpu.dot_dimension_numbers<[1], [1], [0], [0], [0, 0, 1, 0], [], []>} : vector<16x32xf32>, vector<32x32xf32>, vector<16x32xf32> -> vector<16x32xf32>
    %cst_19 = arith.constant dense<0.000000e+00> : vector<16x32xf32>
    %33 = tpu.matmul %6, %5, %cst_19 {dimension_numbers = #tpu.dot_dimension_numbers<[1], [1], [0], [0], [0, 0, 1, 0], [], []>} : vector<16x32xf32>, vector<32x32xf32>, vector<16x32xf32> -> vector<16x32xf32>
    %34 = arith.addf %32, %33 : vector<16x32xf32>
    %c0_20 = arith.constant 0 : index
    %c0_21 = arith.constant 0 : index
    %35 = vector.load %arg6[%c0_20, %c0_21] : memref<1x32xf32, #tpu.memory_space<vmem>>, vector<1x32xf32>
    %36 = vector.broadcast %35 : vector<1x32xf32> to vector<16x32xf32>
    %37 = arith.addf %34, %36 : vector<16x32xf32>
    %38 = math.tanh %37 : vector<16x32xf32>
    %39 = vector.shape_cast %38 : vector<16x32xf32> to vector<2x8x32xf32>
    %c0_22 = arith.constant 0 : index
    %c0_23 = arith.constant 0 : index
    %c0_24 = arith.constant 0 : index
    %40 = vector.load %arg7[%c0_22, %c0_23, %c0_24] : memref<2x8x32xf32, #tpu.memory_space<vmem>>, vector<2x8x32xf32>
    tpu.vector_store %arg7[%c0_22, %c0_23, %c0_24], %39 {strides = array<i32>} : memref<2x8x32xf32, #tpu.memory_space<vmem>>, vector<2x8x32xf32>,
    return
  }
  func.func @transform_0(%arg0: i32, %arg1: i32) -> (i32, i32, i32) {
    %c0_i32 = arith.constant 0 : i32
    %c0_i32_0 = arith.constant 0 : i32
    return %arg0, %arg1, %c0_i32 : i32, i32, i32
  }
  func.func @transform_1(%arg0: i32, %arg1: i32) -> (i32, i32, i32) {
    %c0_i32 = arith.constant 0 : i32
    %c0_i32_0 = arith.constant 0 : i32
    %c0_i32_1 = arith.constant 0 : i32
    return %arg0, %c0_i32, %c0_i32_0 : i32, i32, i32
  }
  func.func @transform_2(%arg0: i32, %arg1: i32) -> (i32, i32) {
    %c0_i32 = arith.constant 0 : i32
    %c0_i32_0 = arith.constant 0 : i32
    %c0_i32_1 = arith.constant 0 : i32
    return %c0_i32, %c0_i32_0 : i32, i32
  }
  func.func @transform_3(%arg0: i32, %arg1: i32) -> (i32, i32) {
    %c0_i32 = arith.constant 0 : i32
    %c0_i32_0 = arith.constant 0 : i32
    %c0_i32_1 = arith.constant 0 : i32
    return %c0_i32, %c0_i32_0 : i32, i32
  }
  func.func @transform_4(%arg0: i32, %arg1: i32) -> (i32, i32) {
    %c0_i32 = arith.constant 0 : i32
    %c0_i32_0 = arith.constant 0 : i32
    %c0_i32_1 = arith.constant 0 : i32
    return %c0_i32, %c0_i32_0 : i32, i32
  }
  func.func @transform_5(%arg0: i32, %arg1: i32) -> (i32, i32, i32) {
    %c0_i32 = arith.constant 0 : i32
    %c0_i32_0 = arith.constant 0 : i32
    return %arg0, %arg1, %c0_i32 : i32, i32, i32
  }
  func.func @transform_6(%arg0: i32, %arg1: i32) -> (i32, i32, i32) {
    %c0_i32 = arith.constant 0 : i32
    %c0_i32_0 = arith.constant 0 : i32
    return %arg0, %arg1, %c0_i32 : i32, i32, i32
  }
}

</mosaic_0001>

<bundles_post_ra>
// kernel: tpu_custom_call.1
= control target key start
LH: loop header
LB: loop body
LE: loop exit
PB: predicated region body
PF: predicated region fallthrough
CT: control target
= control target key end

     0   :  { %12 = vsyncpa [#allocation3], 0  ;;  %vm66_vm0 = vcmask 261120   ;;  %s786_s0 = inlined_call_operand.vmem [shape: f32[2,8,32], index: 0, kind: input, shape index: {}]   ;;  %s787_s1 = inlined_call_operand.vmem [shape: f32[2,128,32], index: 1, kind: input, shape index: {}]   ;;  %s788_s2 = inlined_call_operand.vmem [shape: f32[32,32], index: 2, kind: input, shape index: {}]   ;;  %s789_s3 = inlined_call_operand.vmem [shape: f32[32,64], index: 3, kind: input, shape index: {}]   ;;  %s790_s4 = inlined_call_operand.vmem [shape: f32[1,32], index: 4, kind: input, shape index: {}]   ;;  %s791_s5 = inlined_call_operand.hbm [shape: f32[2,8,32], index: 5, kind: output, shape index: {0}]   ;;  %s792_s6 = inlined_call_operand.hbm [shape: f32[2,8,128], index: 6, kind: output, shape index: {1}]  }
   0x1   :  { %v61_v0 = vld [vmem:[%s788_s2 + $0x18] sm:$0xff]  ;;  %v60_v1 = vld [vmem:[%s788_s2 + $0x10] sm:$0xff]  ;;  %v59_v2 = vld [vmem:[%s788_s2 + $0x8] sm:$0xff] }
   0x2   :  { %85 = vmatpush.msra.mxu0 %v61_v0  ;;  %v41_v3 = vld [vmem:[%s787_s1 + $0x78] sm:$0xff]  ;;  %v58_v5 = vld [vmem:[%s788_s2] sm:$0xff]  ;;  %v40_v6 = vld [vmem:[%s787_s1 + $0x70] sm:$0xff] }
   0x3   :  { %437 = vmatpush.xpose.msk.msra.mxu1 %vm66_vm0, %v41_v3  ;;  %v57_v4 = vld [vmem:[%s787_s1 + $0xf8] sm:$0xff]  ;;  %269 = vmatpush.msra.mxu3 %v41_v3  ;;  %v619_v7 = vld [vmem:[%s786_s0] sm:$0xff]  ;;  %v56_v8 = vld [vmem:[%s787_s1 + $0xf0] sm:$0xff] }
   0x4   :  { %86 = vmatpush.msra.mxu0 %v60_v1  ;;  %454 = vmatpush.xpose.msk.msra.mxu2 %vm66_vm0, %v57_v4  ;;  %v39_v9 = vld [vmem:[%s787_s1 + $0x68] sm:$0xff] }
   0x5   :  { %270 = vmatpush.msra.mxu3 %v40_v6 }
   0x6   :  { %87 = vmatpush.msra.mxu0 %v59_v2 }
   0x7   :  { %438 = vmatpush.xpose.msk.msra.mxu1 %vm66_vm0, %v40_v6 }
   0x8   :  { %88 = vmatpush.msra.mxu0 %v58_v5  ;;  %455 = vmatpush.xpose.msk.msra.mxu2 %vm66_vm0, %v56_v8 }
   0x9   :  { %435 = vmatmul.msk.f32.vlgmr.msra.gmra.mxu0 %vm66_vm0, %v619_v7 }
   0xa   :  { %13 = vsyncpa [#allocation5], 0  ;;  %v55_v10 = vld [vmem:[%s787_s1 + $0xe8] sm:$0xff]  ;;  %271 = vmatpush.msra.mxu3 %v39_v9  ;;  %289 = vmatpush.msrb.mxu0 %v57_v4  ;;  %v38_v11 = vld [vmem:[%s787_s1 + $0x60] sm:$0xff]  ;;  %v238_v40 = vlaneseq  ;;  %s553_s21 = smov 96   ;;  %s418_s30 = sshll.u32 %s792_s6, 4  ;;  %s419_s30 = int_to_ptr.hbm [resolvable:$true] %s418_s30 }
   0xb   :  { %439 = vmatpush.xpose.msk.msra.mxu1 %vm66_vm0, %v39_v9  ;;  %v37_v12 = vld [vmem:[%s787_s1 + $0x58] sm:$0xff]  ;;  %v645_v13 = vld [vmem:[%s786_s0 + $0x8] sm:$0xff]  ;;  %v54_v14 = vld [vmem:[%s787_s1 + $0xe0] sm:$0xff]  ;;  %s555_s7 = smov 128   ;;  %s556_s8 = smov 8  }
   0xc   :  { %272 = vmatpush.msra.mxu3 %v38_v11  ;;  %456 = vmatpush.xpose.msk.msra.mxu2 %vm66_vm0, %v55_v10  ;;  %v36_v15 = vld [vmem:[%s787_s1 + $0x50] sm:$0xff]  ;;  %v35_v16 = vld [vmem:[%s787_s1 + $0x48] sm:$0xff]  ;;  %v53_v17 = vld [vmem:[%s787_s1 + $0xd8] sm:$0xff]  ;;  %v239_v41 = vand.u32 127, %v238_v40  ;;  %s557_s6 = smov [#allocation2]   ;;  %s405_s14 = sshll.u32 %s791_s5, 4  ;;  %s406_s14 = int_to_ptr.hbm [resolvable:$true] %s405_s14 }
   0xd   :  { %290 = vmatpush.msrb.mxu0 %v56_v8  ;;  %v34_v18 = vld [vmem:[%s787_s1 + $0x40] sm:$0xff]  ;;  %v33_v19 = vld [vmem:[%s787_s1 + $0x38] sm:$0xff]  ;;  %v52_v20 = vld [vmem:[%s787_s1 + $0xd0] sm:$0xff]  ;;  %s403_s11 = sshll.u32 %s557_s6, 4  ;;  %s404_s11 = int_to_ptr.vmem [resolvable:$true] %s403_s11 }
   0xe   :  { %273 = vmatpush.msra.mxu3 %v37_v12  ;;  %v32_v21 = vld [vmem:[%s787_s1 + $0x30] sm:$0xff]  ;;  %v51_v22 = vld [vmem:[%s787_s1 + $0xc8] sm:$0xff]  ;;  %v50_v24 = vld [vmem:[%s787_s1 + $0xc0] sm:$0xff]  ;;  %vm240_vm1 = vcmp.lt.s32.totalorder %v239_v41, 8 }
   0xf   :  { %291 = vmatpush.msrb.mxu0 %v55_v10  ;;  %440 = vmatpush.xpose.msk.msra.mxu1 %vm66_vm0, %v38_v11  ;;  %v31_v23 = vld [vmem:[%s787_s1 + $0x28] sm:$0xff]  ;;  %v30_v25 = vld [vmem:[%s787_s1 + $0x20] sm:$0xff]  ;;  %v49_v26 = vld [vmem:[%s787_s1 + $0xb8] sm:$0xff] }
  0x10   :  { %274 = vmatpush.msra.mxu3 %v36_v15  ;;  %457 = vmatpush.xpose.msk.msra.mxu2 %vm66_vm0, %v54_v14  ;;  %v29_v27 = vld [vmem:[%s787_s1 + $0x18] sm:$0xff]  ;;  %v48_v28 = vld [vmem:[%s787_s1 + $0xb0] sm:$0xff]  ;;  %v47_v30 = vld [vmem:[%s787_s1 + $0xa8] sm:$0xff] }
  0x11   :  { %436 = vmatmul.msk.f32.gmra.mxu0 %vm66_vm0, %v645_v13  ;;  %v28_v29 = vld [vmem:[%s787_s1 + $0x10] sm:$0xff]  ;;  %v27_v31 = vld [vmem:[%s787_s1 + $0x8] sm:$0xff]  ;;  %v46_v32 = vld [vmem:[%s787_s1 + $0xa0] sm:$0xff] }
  0x12   :  { %275 = vmatpush.msra.mxu3 %v35_v16  ;;  %292 = vmatpush.msrb.mxu0 %v54_v14  ;;  %v26_v33 = vld [vmem:[%s787_s1] sm:$0xff]  ;;  %v45_v34 = vld [vmem:[%s787_s1 + $0x98] sm:$0xff]  ;;  %v44_v35 = vld [vmem:[%s787_s1 + $0x90] sm:$0xff] }
  0x13   :  { %441 = vmatpush.xpose.msk.msra.mxu1 %vm66_vm0, %v37_v12  ;;  %v43_v36 = vld [vmem:[%s787_s1 + $0x88] sm:$0xff]  ;;  %v42_v37 = vld [vmem:[%s787_s1 + $0x80] sm:$0xff]  ;;  %v65_v56 = vld [vmem:[%s789_s3 + $0x18] sm:$0xff] }
  0x14   :  { %276 = vmatpush.msra.mxu3 %v34_v18  ;;  %458 = vmatpush.xpose.msk.msra.mxu2 %vm66_vm0, %v53_v17  ;;  %v63_v54 = vld [vmem:[%s789_s3 + $0x8] sm:$0xff]  ;;  %v62_v55 = vld [vmem:[%s789_s3] sm:$0xff]  ;;  %v64_v58 = vld [vmem:[%s789_s3 + $0x10] sm:$0xff]  ;;  %s554_s3 = smov [#allocation4]  }
  0x15   :  { %293 = vmatpush.msrb.mxu0 %v53_v17  ;;  %319 = vrot.lane.b32.xlu2 %v65_v56, %s553_s21  ;;  %s416_s0 = sshll.u32 %s554_s3, 4  ;;  %s417_s0 = int_to_ptr.vmem [resolvable:$true] %s416_s0 }
  0x16   :  { %277 = vmatpush.msra.mxu3 %v33_v19 }
  0x17   :  { %294 = vmatpush.msrb.mxu0 %v52_v20  ;;  %442 = vmatpush.xpose.msk.msra.mxu1 %vm66_vm0, %v36_v15 }
  0x18   :  { %278 = vmatpush.msra.mxu3 %v32_v21  ;;  %459 = vmatpush.xpose.msk.msra.mxu2 %vm66_vm0, %v52_v20 }
  0x19   :  { %295 = vmatpush.msrb.mxu0 %v51_v22 }
  0x1a   :  { %279 = vmatpush.msra.mxu3 %v31_v23 }
  0x1b   :  { %296 = vmatpush.msrb.mxu0 %v50_v24  ;;  %443 = vmatpush.xpose.msk.msra.mxu1 %vm66_vm0, %v35_v16 }
  0x1c   :  { %280 = vmatpush.msra.mxu3 %v30_v25  ;;  %460 = vmatpush.xpose.msk.msra.mxu2 %vm66_vm0, %v51_v22 }
  0x1d   :  { %297 = vmatpush.msrb.mxu0 %v49_v26  ;;  %317 = vrot.lane.b32.xlu2 %v64_v58, %s553_s21 }
  0x1e   :  { %281 = vmatpush.msra.mxu3 %v29_v27 }
  0x1f   :  { %298 = vmatpush.msrb.mxu0 %v48_v28  ;;  %444 = vmatpush.xpose.msk.msra.mxu1 %vm66_vm0, %v34_v18 }
  0x20   :  { %282 = vmatpush.msra.mxu3 %v28_v29  ;;  %461 = vmatpush.xpose.msk.msra.mxu2 %vm66_vm0, %v50_v24 }
  0x21   :  { %299 = vmatpush.msrb.mxu0 %v47_v30 }
  0x22   :  { %283 = vmatpush.msra.mxu3 %v27_v31 }
  0x23   :  { %300 = vmatpush.msrb.mxu0 %v46_v32  ;;  %445 = vmatpush.xpose.msk.msra.mxu1 %vm66_vm0, %v33_v19 }
  0x24   :  { %284 = vmatpush.msra.mxu3 %v26_v33  ;;  %462 = vmatpush.xpose.msk.msra.mxu2 %vm66_vm0, %v49_v26 }
  0x25   :  { %301 = vmatpush.msrb.mxu0 %v45_v34 }
  0x27   :  { %302 = vmatpush.msrb.mxu0 %v44_v35  ;;  %446 = vmatpush.xpose.msk.msra.mxu1 %vm66_vm0, %v32_v21 }
  0x28   :  { %463 = vmatpush.xpose.msk.msra.mxu2 %vm66_vm0, %v48_v28 }
  0x29   :  { %303 = vmatpush.msrb.mxu0 %v43_v36 }
  0x2b   :  { %447 = vmatpush.xpose.msk.msra.mxu1 %vm66_vm0, %v31_v23  ;;  %304 = vmatpush.msrb.mxu0 %v42_v37 }
  0x2c   :  { %464 = vmatpush.xpose.msk.msra.mxu2 %vm66_vm0, %v47_v30 }
  0x2d   :  { %477 = vmatpush.xpose.msk.msra.mxu0 %vm66_vm0, %v65_v56 }
  0x2f   :  { %448 = vmatpush.xpose.msk.msra.mxu1 %vm66_vm0, %v30_v25 }
  0x30   :  { %465 = vmatpush.xpose.msk.msra.mxu2 %vm66_vm0, %v46_v32 }
  0x31   :  { %478 = vmatpush.xpose.msk.msra.mxu0 %vm66_vm0, %v64_v58 }
  0x33   :  { %449 = vmatpush.xpose.msk.msra.mxu1 %vm66_vm0, %v29_v27 }
  0x34   :  { %466 = vmatpush.xpose.msk.msra.mxu2 %vm66_vm0, %v45_v34 }
  0x35   :  { %479 = vmatpush.xpose.msk.msra.mxu0 %vm66_vm0, %v63_v54 }
  0x37   :  { %450 = vmatpush.xpose.msk.msra.mxu1 %vm66_vm0, %v28_v29 }
  0x38   :  { %467 = vmatpush.xpose.msk.msra.mxu2 %vm66_vm0, %v44_v35 }
  0x39   :  { %480 = vmatpush.xpose.msk.msra.mxu0 %vm66_vm0, %v62_v55 }
  0x3b   :  { %451 = vmatpush.xpose.msk.msra.mxu1 %vm66_vm0, %v27_v31 }
  0x3c   :  { %468 = vmatpush.xpose.msk.msra.mxu2 %vm66_vm0, %v43_v36 }
  0x3f   :  { %452 = vmatpush.xpose.msk.msra.mxu1 %vm66_vm0, %v26_v33 }
  0x40   :  { %469 = vmatpush.xpose.msk.msra.mxu2 %vm66_vm0, %v42_v37 }
  0x6f   :  { %v320_v6 = vpop.permute.xlu2 %319 }
  0x70   :  { %471 = vmatpush.xpose.msk.msrb.mxu3 %vm66_vm0, %v320_v6 }
  0x77   :  { %v318_v8 = vpop.permute.xlu2 %317 }
  0x78   :  { %472 = vmatpush.xpose.msk.msrb.mxu3 %vm66_vm0, %v318_v8 }
  0x86   :  { %v90_v38 = vpop.f32.mrf.mxu0 }
  0x87   :  { %453 = vmatmul.msk.f32.vlgmr.msra.gmra.mxu1 %vm66_vm0, %v90_v38 }
  0x8e   :  { %v93_v39 = vpop.f32.mrf.mxu0 }
  0x8f   :  { %470 = vmatmul.msk.f32.vlgmr.msra.gmra.mxu2 %vm66_vm0, %v93_v39 }
 0x104   :  { %v164_v42 = vpop.f32.mrf.mxu1 }
 0x105   :  { %v241_v43 = vsel %vm240_vm1, %v164_v42, -1e+30 }
 0x106   :  { %243 = vmax.xlane.f32.xlu0 %v241_v43 }
 0x112   :  { %v235_v44 = vpop.f32.mrf.mxu2 }
 0x113   :  { %v242_v45 = vsel %vm240_vm1, %v235_v44, -1e+30 }
 0x114   :  { %245 = vmax.xlane.f32.xlu0 %v242_v45 }
 0x128   :  { %315 = vrot.lane.b32.xlu0 %v63_v54, %s553_s21 }
 0x179   :  { %v244_v46 = vpop.xlane.xlu0 %243 }
 0x17a   :  { %v247_v47 = vsub.f32 %v241_v43, %v244_v46 }
 0x17c   :  { %v249_v48 = vmul.f32 1.442695, %v247_v47 }
 0x17e   :  { %489 = vpow2.f32 %v249_v48 }
 0x184   :  { %v490_v49 = vpop.eup %489 }
 0x185   :  { %253 = vadd.xlane.f32.xlu1 %v490_v49 }
 0x187   :  { %v246_v50 = vpop.xlane.xlu0 %245 }
 0x188   :  { %v248_v51 = vsub.f32 %v242_v45, %v246_v50 }
 0x18a   :  { %v251_v52 = vmul.f32 1.442695, %v248_v51 }
 0x18c   :  { %491 = vpow2.f32 %v251_v52 }
 0x192   :  { %v492_v53 = vpop.eup %491 }
 0x193   :  { %255 = vadd.xlane.f32.xlu1 %v492_v53 }
 0x19a   :  { %v316_v9 = vpop.permute.xlu0 %315 }
 0x19b   :  { %473 = vmatpush.xpose.msk.msrb.mxu3 %vm66_vm0, %v316_v9 }
 0x1ac   :  { %313 = vrot.lane.b32.xlu1 %v62_v55, %s553_s21 }
 0x1f8   :  { %v254_v57 = vpop.xlane.xlu1 %253 }
 0x1f9   :  { %493 = vrcp.f32 %v254_v57 }
 0x1ff   :  { %v494_v59 = vpop.eup %493 }
 0x200   :  { %v259_v60 = vmul.f32 %v494_v59, %v254_v57 }
 0x202   :  { %v261_v61 = vsub.f32 2.0, %v259_v60 }
 0x204   :  { %v263_v62 = vmul.f32 %v494_v59, %v261_v61 }
 0x206   :  { %v256_v63 = vpop.xlane.xlu1 %255  ;;  %v265_v0 = vmul.f32 %v490_v49, %v263_v62 }
 0x207   :  { %495 = vrcp.f32 %v256_v63 }
 0x208   :  { %267 = vst [vmem:[#allocation4] sm:$0xff] %v265_v0  ;;  %285 = vmatmul.f32.vlgmr.msra.gmra.mxu3 %v265_v0 }
 0x20d   :  { %v496_v1 = vpop.eup %495 }
 0x20e   :  { %v260_v2 = vmul.f32 %v496_v1, %v256_v63 }
 0x210   :  { %v262_v3 = vsub.f32 2.0, %v260_v2 }
 0x212   :  { %v264_v4 = vmul.f32 %v496_v1, %v262_v3 }
 0x214   :  { %v266_v5 = vmul.f32 %v492_v53, %v264_v4 }
 0x216   :  { %268 = vst [vmem:[#allocation4 + $0x8] sm:$0xff] %v266_v5  ;;  %305 = vmatmul.f32.vlgmr.msrb.gmra.mxu0 %v266_v5 }
 0x217   :  { %424 = dma.vmem_to_hbm [thread:$0]  %s417_s0, 256, %s419_s30, [#allocation5], %s555_s7, %s555_s7, %s556_s8  }
 0x21e   :  { %v314_v10 = vpop.permute.xlu1 %313 }
 0x21f   :  { %474 = vmatpush.xpose.msk.msrb.mxu3 %vm66_vm0, %v314_v10 }
 0x222   :  { %475 = vmatmul.msk.f32.vlgmr.msrb.gmra.mxu3 %vm66_vm0, %v619_v7 }
 0x22a   :  { %476 = vmatmul.msk.f32.gmra.mxu3 %vm66_vm0, %v645_v13  ;;  %v488_v13 = vld [vmem:[%s790_s4] ss:$0 sm:$0xff] }
 0x28b   :  { %v286_v11 = vpop.f32.mrf.mxu3 }
 0x28c   :  { %481 = vmatmul.msk.f32.vlgmr.msra.gmra.mxu0 %vm66_vm0, %v286_v11 }
 0x293   :  { %v306_v12 = vpop.f32.mrf.mxu0 }
 0x294   :  { %482 = vmatmul.msk.f32.gmra.mxu0 %vm66_vm0, %v306_v12 }
 0x2a5   :  { %v346_v7 = vpop.f32.mrf.mxu3 }
 0x2ad   :  { %v349_v17 = vpop.f32.mrf.mxu3 }
 0x309   :  { %v383_v14 = vpop.f32.mrf.mxu0 }
 0x30a   :  { %v384_v15 = vadd.f32 %v383_v14, %v346_v7 }
 0x30c   :  { %v393_v16 = vadd.f32 %v488_v13, %v384_v15 }
 0x30e   :  { %497 = vtanh.f32 %v393_v16 }
 0x311   :  { %v386_v18 = vpop.f32.mrf.mxu0 }
 0x312   :  { %v387_v19 = vadd.f32 %v386_v18, %v349_v17 }
 0x314   :  { %v498_v20 = vpop.eup %497  ;;  %v394_v21 = vadd.f32 %v488_v13, %v387_v19 }
 0x315   :  { %397 = vst.msk [vmem:[#allocation2] sm:$0xff] %vm66_vm0, %v498_v20 }
 0x316   :  { %499 = vtanh.f32 %v394_v21 }
 0x31c   :  { %v500_v22 = vpop.eup %499 }
 0x31d   :  { %398 = vst.msk [vmem:[#allocation2 + $0x8] sm:$0xff] %vm66_vm0, %v500_v22 }
 0x31e   :  { %411 = dma.vmem_to_hbm [thread:$0]  %s404_s11, 256, %s406_s14, [#allocation3], %s555_s7, %s555_s7, %s556_s8  }
 0x31f   :  { %549 = dma.done.wait [#allocation3], 256  }
 0x320   :  { %550 = vsyncadd [#allocation3], 4294967040 }
 0x321   :  { %551 = dma.done.wait [#allocation5], 256  }
 0x322   :  { %552 = vsyncadd [#allocation5], 4294967040 }
 0x323   :  { %433 = vsyncpa [#allocation3], 1 }
 0x324   :  { %434 = vsyncpa [#allocation5], 1 }

</bundles_post_ra>
